<compile_context>
chip_gen: v6e
topology: v6e:2x2x1
jax: 0.10.0
libtpu: 0.0.40
codegen_flags: <defaults>
</compile_context>

<pallas_src>
import functools
import math

import jax
import jax.numpy as jnp
import numpy as np
from jax.experimental import pallas as pl
from jax.experimental.pallas import tpu as pltpu


def _timestep_embed_kernel(t_ref, w1_ref, b1_ref, w2_ref, b2_ref, out_ref,
                           *, half: int, scale: float):
    # (Bt, 1) timesteps for this batch tile; angle math in f32.
    t = t_ref[...].astype(jnp.float32)

    # Sinusoidal frequencies generated in-kernel (iota + EUP exp), no HBM input.
    log_step = math.log(10000.0) / (half - 1)
    k = jax.lax.broadcasted_iota(jnp.int32, (1, half), 1).astype(jnp.float32)
    freqs = jnp.exp(k * (-log_step))                       # (1, half)

    ang = (scale * t) * freqs                              # (Bt, half) f32

    # concat(sin, cos) along lanes at the 128-lane tile boundary (pure vreg
    # placement).  bf16 operands feed the MXU's native path; f32 accumulation.
    emb = jnp.concatenate(
        [jnp.sin(ang).astype(jnp.bfloat16),
         jnp.cos(ang).astype(jnp.bfloat16)],
        axis=-1)                                           # (Bt, 2*half) bf16

    # Linear1 as a single K = 2*half matmul against the full (F, D) weight.
    h = jnp.dot(emb, w1_ref[...], preferred_element_type=jnp.float32)
    h = h + b1_ref[...]                                    # (Bt, D) f32

    # SiLU: x * sigmoid(x)  (EUP logistic + VPU multiply), kept in f32
    # (v5e has no bf16 EUP; EUP slot already hides the matmuls here).
    h = h * jax.lax.logistic(h)

    # Linear2: bf16 operands, f32 accumulation.
    out = jnp.dot(h.astype(jnp.bfloat16), w2_ref[...],
                  preferred_element_type=jnp.float32) + b2_ref[...]
    out_ref[...] = out.astype(out_ref.dtype)


def prepare_params(params):
    """One-time parameter prep (do this at init, not per call):
    weights -> bf16, (in, out) layout; biases -> f32 (1, D)."""
    return {
        "w1": params["w1"].astype(jnp.bfloat16),
        "b1": params["b1"].astype(jnp.float32),
        "w2": params["w2"].astype(jnp.bfloat16),
        "b2": params["b2"].astype(jnp.float32),
    }


def timestep_embedding(timestep, params, *, scale: float = 1000.0,
                       max_block_b: int = 256, out_dtype=None):
    """timestep: (B,) float. params: w1 (F, D) bf16, b1 (1, D) f32,
    w2 (D, D) bf16, b2 (1, D) f32 (weights pre-transposed vs torch Linear).
    Returns (B, D) in `out_dtype` (defaults to timestep.dtype)."""
    B = timestep.shape[0]
    F, D = params["w1"].shape
    half = F // 2
    assert F % 2 == 0 and half % 128 == 0 and D % 128 == 0, (
        "kernel assumes F/2 and D are multiples of 128 (lane-dense tiles)")

    # Batch tile: multiple of 8 sublanes; capped at max_block_b so large B
    # yields >=2 grid steps (megacore sharding, smaller live f32 temporaries).
    Bt = min(max_block_b, 8 * pl.cdiv(B, 8))
    Bp = Bt * pl.cdiv(B, Bt)

    t2d = jnp.pad(timestep, (0, Bp - B)).reshape(Bp, 1).astype(jnp.float32)

    kernel = functools.partial(_timestep_embed_kernel, half=half, scale=scale)
    const2d = lambda i: (0, 0)
    if out_dtype is None:
        out_dtype = timestep.dtype

    out = pl.pallas_call(
        kernel,
        out_shape=jax.ShapeDtypeStruct((Bp, D), out_dtype),
        grid_spec=pl.GridSpec(
            grid=(Bp // Bt,),
            in_specs=[
                pl.BlockSpec((Bt, 1), lambda i: (i, 0)),    # timesteps
                pl.BlockSpec((F, D), const2d),              # W1 (bf16, full)
                pl.BlockSpec((1, D), const2d),              # b1
                pl.BlockSpec((D, D), const2d),              # W2 (bf16)
                pl.BlockSpec((1, D), const2d),              # b2
            ],
            out_specs=pl.BlockSpec((Bt, D), lambda i: (i, 0)),
        ),
        compiler_params=pltpu.CompilerParams(
            dimension_semantics=("parallel",)),
    )(t2d, params["w1"], params["b1"], params["w2"], params["b2"])

    return out[:B]


def timestep_embedding_ref(timestep, params, *, scale: float = 1000.0):
    """Pure-JAX f32 reference with the module's semantics (for verification)."""
    F, D = params["w1"].shape
    half = F // 2
    log_step = math.log(10000.0) / (half - 1)
    freqs = jnp.exp(jnp.arange(half, dtype=jnp.float32) * (-log_step))
    ang = (scale * timestep[:, None]) * freqs[None, :]
    th = jnp.concatenate([jnp.sin(ang), jnp.cos(ang)], axis=-1).astype(timestep.dtype)
    h = jnp.dot(th, params["w1"], precision="highest") + params["b1"]
    h = h * jax.nn.sigmoid(h)                              # SiLU
    return jnp.dot(h, params["w2"], precision="highest") + params["b2"]


if __name__ == "__main__":
    B = 2            # batch
    FREQ = 256       # freq_embed_dim (module default)
    DIM = 256        # dim

    key = jax.random.PRNGKey(0)
    k_t, k_w1, k_b1, k_w2, k_b2 = jax.random.split(key, 5)

    # Flow-matching style timesteps in [0, 1).
    timestep = jax.random.uniform(k_t, (B,), jnp.float32)

    params_f32 = {
        # Stored as (in, out) = transpose of torch.nn.Linear.weight.
        "w1": (1.0 / math.sqrt(FREQ)) * jax.random.normal(k_w1, (FREQ, DIM), jnp.float32),
        "b1": 0.02 * jax.random.normal(k_b1, (1, DIM), jnp.float32),
        "w2": (1.0 / math.sqrt(DIM)) * jax.random.normal(k_w2, (DIM, DIM), jnp.float32),
        "b2": 0.02 * jax.random.normal(k_b2, (1, DIM), jnp.float32),
    }
    params = prepare_params(params_f32)        # one-time bf16 weight prep

    out = timestep_embedding(timestep, params)
    jax.block_until_ready(out)

    ref = timestep_embedding_ref(timestep, params_f32)
    # bf16 matmul operands with f32 accumulation -> ~1e-2 level agreement.
    np.testing.assert_allclose(np.asarray(out), np.asarray(ref),
                               rtol=2e-2, atol=2e-2)
    print("KERNEL_OK")
</pallas_src>

<mosaic_0001>
module attributes {stable_mosaic.version = 11 : i64} {
  func.func @_timestep_embed_kernel(%arg0: i32, %arg1: memref<8x1xf32, #tpu.memory_space<vmem>>, %arg2: memref<256x256xbf16, #tpu.memory_space<vmem>>, %arg3: memref<1x256xf32, #tpu.memory_space<vmem>>, %arg4: memref<256x256xbf16, #tpu.memory_space<vmem>>, %arg5: memref<1x256xf32, #tpu.memory_space<vmem>>, %arg6: memref<8x256xf32, #tpu.memory_space<vmem>>) attributes {dimension_semantics = [#tpu.dimension_semantics<parallel>], iteration_bounds = array<i64: 1>, scalar_prefetch = 0 : i64, scratch_operands = 0 : i64, tpu.core_type = #tpu.core_type<tc>, window_params = [{transform_indices = @transform_0, window_bounds = array<i64: 8, 1>}, {pipeline_mode = #tpu.pipeline_mode<synchronous>, transform_indices = @transform_1, window_bounds = array<i64: 256, 256>}, {pipeline_mode = #tpu.pipeline_mode<synchronous>, transform_indices = @transform_2, window_bounds = array<i64: 1, 256>}, {pipeline_mode = #tpu.pipeline_mode<synchronous>, transform_indices = @transform_3, window_bounds = array<i64: 256, 256>}, {pipeline_mode = #tpu.pipeline_mode<synchronous>, transform_indices = @transform_4, window_bounds = array<i64: 1, 256>}, {transform_indices = @transform_5, window_bounds = array<i64: 8, 256>}]} {
    %c0 = arith.constant 0 : index
    %c0_0 = arith.constant 0 : index
    %0 = vector.load %arg1[%c0, %c0_0] : memref<8x1xf32, #tpu.memory_space<vmem>>, vector<8x1xf32>
    %1 = tpu.iota {dimensions = array<i32: 1>} : vector<1x128xi32>
    %2 = arith.sitofp %1 : vector<1x128xi32> to vector<1x128xf32>
    %cst = arith.constant -0.0725223646 : f32
    %3 = vector.broadcast %cst : f32 to vector<1x128xf32>
    %4 = arith.mulf %2, %3 : vector<1x128xf32>
    %5 = math.exp %4 : vector<1x128xf32>
    %cst_1 = arith.constant 1.000000e+03 : f32
    %6 = vector.broadcast %cst_1 : f32 to vector<8x1xf32>
    %7 = arith.mulf %6, %0 : vector<8x1xf32>
    %8 = vector.broadcast %7 : vector<8x1xf32> to vector<8x128xf32>
    %9 = vector.broadcast %5 : vector<1x128xf32> to vector<8x128xf32>
    %10 = arith.mulf %8, %9 : vector<8x128xf32>
    %11 = math.sin %10 : vector<8x128xf32>
    %12 = arith.truncf %11 : vector<8x128xf32> to vector<8x128xbf16>
    %13 = math.cos %10 : vector<8x128xf32>
    %14 = arith.truncf %13 : vector<8x128xf32> to vector<8x128xbf16>
    %15 = tpu.concatenate %12, %14 in 1 : vector<8x128xbf16>, vector<8x128xbf16> -> vector<8x256xbf16>
    %c0_2 = arith.constant 0 : index
    %c0_3 = arith.constant 0 : index
    %16 = vector.load %arg2[%c0_2, %c0_3] : memref<256x256xbf16, #tpu.memory_space<vmem>>, vector<256x256xbf16>
    %cst_4 = arith.constant dense<0.000000e+00> : vector<8x256xf32>
    %17 = tpu.matmul %15, %16, %cst_4 {dimension_numbers = #tpu.dot_dimension_numbers<[1], [0], [0], [1], [0, 0, 1, 1], [], []>} : vector<8x256xbf16>, vector<256x256xbf16>, vector<8x256xf32> -> vector<8x256xf32>
    %c0_5 = arith.constant 0 : index
    %c0_6 = arith.constant 0 : index
    %18 = vector.load %arg3[%c0_5, %c0_6] : memref<1x256xf32, #tpu.memory_space<vmem>>, vector<1x256xf32>
    %19 = vector.broadcast %18 : vector<1x256xf32> to vector<8x256xf32>
    %20 = arith.addf %17, %19 : vector<8x256xf32>
    %21 = arith.negf %20 : vector<8x256xf32>
    %22 = math.exp %21 : vector<8x256xf32>
    %cst_7 = arith.constant 1.000000e+00 : f32
    %23 = vector.broadcast %cst_7 : f32 to vector<8x256xf32>
    %24 = arith.addf %23, %22 : vector<8x256xf32>
    %25 = arith.divf %23, %24 : vector<8x256xf32>
    %26 = arith.mulf %20, %25 : vector<8x256xf32>
    %27 = arith.truncf %26 : vector<8x256xf32> to vector<8x256xbf16>
    %c0_8 = arith.constant 0 : index
    %c0_9 = arith.constant 0 : index
    %28 = vector.load %arg4[%c0_8, %c0_9] : memref<256x256xbf16, #tpu.memory_space<vmem>>, vector<256x256xbf16>
    %cst_10 = arith.constant dense<0.000000e+00> : vector<8x256xf32>
    %29 = tpu.matmul %27, %28, %cst_10 {dimension_numbers = #tpu.dot_dimension_numbers<[1], [0], [0], [1], [0, 0, 1, 1], [], []>} : vector<8x256xbf16>, vector<256x256xbf16>, vector<8x256xf32> -> vector<8x256xf32>
    %c0_11 = arith.constant 0 : index
    %c0_12 = arith.constant 0 : index
    %30 = vector.load %arg5[%c0_11, %c0_12] : memref<1x256xf32, #tpu.memory_space<vmem>>, vector<1x256xf32>
    %31 = vector.broadcast %30 : vector<1x256xf32> to vector<8x256xf32>
    %32 = arith.addf %29, %31 : vector<8x256xf32>
    %c0_13 = arith.constant 0 : index
    %c0_14 = arith.constant 0 : index
    %33 = vector.load %arg6[%c0_13, %c0_14] : memref<8x256xf32, #tpu.memory_space<vmem>>, vector<8x256xf32>
    tpu.vector_store %arg6[%c0_13, %c0_14], %32 {strides = array<i32>} : memref<8x256xf32, #tpu.memory_space<vmem>>, vector<8x256xf32>,
    return
  }
  func.func @transform_0(%arg0: i32) -> (i32, i32) {
    %c0_i32 = arith.constant 0 : i32
    %c0_i32_0 = arith.constant 0 : i32
    return %arg0, %c0_i32 : i32, i32
  }
  func.func @transform_1(%arg0: i32) -> (i32, i32) {
    %c0_i32 = arith.constant 0 : i32
    %c0_i32_0 = arith.constant 0 : i32
    %c0_i32_1 = arith.constant 0 : i32
    return %c0_i32, %c0_i32_0 : i32, i32
  }
  func.func @transform_2(%arg0: i32) -> (i32, i32) {
    %c0_i32 = arith.constant 0 : i32
    %c0_i32_0 = arith.constant 0 : i32
    %c0_i32_1 = arith.constant 0 : i32
    return %c0_i32, %c0_i32_0 : i32, i32
  }
  func.func @transform_3(%arg0: i32) -> (i32, i32) {
    %c0_i32 = arith.constant 0 : i32
    %c0_i32_0 = arith.constant 0 : i32
    %c0_i32_1 = arith.constant 0 : i32
    return %c0_i32, %c0_i32_0 : i32, i32
  }
  func.func @transform_4(%arg0: i32) -> (i32, i32) {
    %c0_i32 = arith.constant 0 : i32
    %c0_i32_0 = arith.constant 0 : i32
    %c0_i32_1 = arith.constant 0 : i32
    return %c0_i32, %c0_i32_0 : i32, i32
  }
  func.func @transform_5(%arg0: i32) -> (i32, i32) {
    %c0_i32 = arith.constant 0 : i32
    %c0_i32_0 = arith.constant 0 : i32
    return %arg0, %c0_i32 : i32, i32
  }
}

</mosaic_0001>

<bundles_post_ra>
// kernel: tpu_custom_call.1
= control target key start
LH: loop header
LB: loop body
LE: loop exit
PB: predicated region body
PF: predicated region fallthrough
CT: control target
= control target key end

     0   :  { %10 = vsyncpa [#allocation3], 0  ;;  %s1146_s0 = inlined_call_operand.vmem [shape: f32[8,1], index: 0, kind: input, shape index: {}]   ;;  %s1147_s1 = inlined_call_operand.hbm [shape: bf16[256,256], index: 1, kind: input, shape index: {}]   ;;  %s1148_s2 = inlined_call_operand.vmem [shape: f32[1,256], index: 2, kind: input, shape index: {}]   ;;  %s1149_s3 = inlined_call_operand.hbm [shape: bf16[256,256], index: 3, kind: input, shape index: {}]   ;;  %s1150_s4 = inlined_call_operand.vmem [shape: f32[1,256], index: 4, kind: input, shape index: {}]   ;;  %s1151_s5 = inlined_call_operand.hbm [shape: f32[8,256], index: 5, kind: output, shape index: {}]  }
   0x1   :  { %11 = vsyncpa [#allocation6], 0 }
   0x2   :  { %12 = vsyncpa [#allocation4], 0  ;;  %s1063_s18 = smov [#allocation2]  }
   0x3   :  { %s20_s19 = sshll.u32 %s1063_s18, 4  ;;  %s21_s19 = int_to_ptr.vmem [resolvable:$true] %s20_s19 }
   0x4   :  { %s1005_s20 = scalar_lea.vmem %s21_s19, 4096  ;;  %p1010_p1 = scmp.lt.s32.totalorder %s21_s19, %s21_s19 }
   0x5   :  { %p1006_p0 = scmp.ne.s32.totalorder %s21_s19, %s1005_s20  ;;  %p1011_p2 = scmp.lt.s32.totalorder %s1005_s20, %s1005_s20 }
   0x7   :  { %p1012_p3 = por %p1011_p2, %p1010_p1 }
   0x9   :  { %p1013_p4 = pnand %p1012_p3, %p1006_p0 }
   0xb   :  { %1016 = shalt.err (!%p1013_p4)
}
   0xc   :  { %s1064_s21 = smov 128   ;;  %s1065_s22 = smov 8  }
   0xd   :  { %26 = dma.hbm_to_vmem [thread:$0]  %s1147_s1, 4096, %s21_s19, [#allocation3], %s1064_s21, %s1064_s21, %s1065_s22  }
   0xe   :  { %s1066_s25 = smov [#allocation5]  }
   0xf   :  { %s34_s26 = sshll.u32 %s1066_s25, 4  ;;  %s35_s26 = int_to_ptr.vmem [resolvable:$true] %s34_s26 }
  0x10   :  { %s1025_s27 = scalar_lea.vmem %s35_s26, 4096  ;;  %p1030_p6 = scmp.lt.s32.totalorder %s35_s26, %s35_s26 }
  0x11   :  { %p1026_p5 = scmp.ne.s32.totalorder %s35_s26, %s1025_s27  ;;  %p1031_p7 = scmp.lt.s32.totalorder %s1025_s27, %s1025_s27 }
  0x13   :  { %p1032_p8 = por %p1031_p7, %p1030_p6 }
  0x15   :  { %p1033_p9 = pnand %p1032_p8, %p1026_p5 }
  0x17   :  { %1036 = shalt.err (!%p1033_p9)
}
  0x18   :  { %40 = dma.hbm_to_vmem [thread:$0]  %s1149_s3, 4096, %s35_s26, [#allocation6], %s1064_s21, %s1064_s21, %s1065_s22  }
  0x19   :  { %1057 = dma.done.wait [#allocation3], 4096  }
  0x1a   :  { %1058 = vsyncadd [#allocation3], 4294963200 }
  0x1b   :  { %1059 = dma.done.wait [#allocation6], 4096  }
  0x1c   :  { %1060 = vsyncadd [#allocation6], 4294963200  ;;  %v1067_v0 = vmov 0   ;;  %v49_v1 = vld [vmem:[%s1146_s0] sm:$0xff]  ;;  %v887_v3 = vld [vmem:[#allocation2 + $0x74] ss:$8 sps:$4 sm:$0xff]   ;;  %v50_v38 = vlaneseq }
  0x1d   :  { %886 = vset.pattern.permute.xlu0 %v1067_v0  ;;  %v56_v2 = vmul.f32 1000.0, %v49_v1  ;;  %v889_v4 = vld [vmem:[#allocation2 + $0x70] ss:$8 sps:$4 sm:$0xff]   ;;  %v890_v5 = vld [vmem:[#allocation2 + $0x64] ss:$8 sps:$4 sm:$0xff]   ;;  %476 = vmatprep.subr.bf16.mxu0 %v887_v3  ;;  %s1074_s7 = smov [#allocation7]  }
  0x1e   :  { %477 = vmatpush1.bf16.msra.mxu0 %v889_v4  ;;  %v892_v6 = vld [vmem:[#allocation2 + $0x60] ss:$8 sps:$4 sm:$0xff]   ;;  %v893_v7 = vld [vmem:[#allocation2 + $0x54] ss:$8 sps:$4 sm:$0xff]   ;;  %v895_v8 = vld [vmem:[#allocation2 + $0x50] ss:$8 sps:$4 sm:$0xff]  }
  0x1f   :  { %59 = vperm.xlu0 %886, %v56_v2   ;;  %478 = vmatprep.subr.bf16.mxu0 %v890_v5  ;;  %v896_v9 = vld [vmem:[#allocation2 + $0x44] ss:$8 sps:$4 sm:$0xff]   ;;  %v898_v10 = vld [vmem:[#allocation2 + $0x40] ss:$8 sps:$4 sm:$0xff]   ;;  %v899_v11 = vld [vmem:[#allocation2 + $0x34] ss:$8 sps:$4 sm:$0xff]  }
  0x20   :  { %v901_v12 = vld [vmem:[#allocation2 + $0x30] ss:$8 sps:$4 sm:$0xff]   ;;  %v902_v13 = vld [vmem:[#allocation2 + $0x24] ss:$8 sps:$4 sm:$0xff]   ;;  %v904_v14 = vld [vmem:[#allocation2 + $0x20] ss:$8 sps:$4 sm:$0xff]  }
  0x21   :  { %v905_v15 = vld [vmem:[#allocation2 + $0x14] ss:$8 sps:$4 sm:$0xff]   ;;  %v907_v16 = vld [vmem:[#allocation2 + $0x10] ss:$8 sps:$4 sm:$0xff]   ;;  %v908_v17 = vld [vmem:[#allocation2 + $0x4] ss:$8 sps:$4 sm:$0xff]  }
  0x22   :  { %479 = vmatpush1.bf16.msra.mxu0 %v892_v6  ;;  %v910_v18 = vld [vmem:[#allocation2] ss:$8 sps:$4 sm:$0xff]   ;;  %v911_v19 = vld [vmem:[#allocation2 + $0xf4] ss:$8 sps:$4 sm:$0xff]   ;;  %v913_v20 = vld [vmem:[#allocation2 + $0xf0] ss:$8 sps:$4 sm:$0xff]  }
  0x23   :  { %480 = vmatprep.subr.bf16.mxu0 %v893_v7  ;;  %v914_v21 = vld [vmem:[#allocation2 + $0xe4] ss:$8 sps:$4 sm:$0xff]   ;;  %v916_v22 = vld [vmem:[#allocation2 + $0xe0] ss:$8 sps:$4 sm:$0xff]   ;;  %v917_v23 = vld [vmem:[#allocation2 + $0xd4] ss:$8 sps:$4 sm:$0xff]  }
  0x24   :  { %v919_v24 = vld [vmem:[#allocation2 + $0xd0] ss:$8 sps:$4 sm:$0xff]   ;;  %v920_v25 = vld [vmem:[#allocation2 + $0xc4] ss:$8 sps:$4 sm:$0xff]   ;;  %v922_v26 = vld [vmem:[#allocation2 + $0xc0] ss:$8 sps:$4 sm:$0xff]  }
  0x25   :  { %v923_v27 = vld [vmem:[#allocation2 + $0xb4] ss:$8 sps:$4 sm:$0xff]   ;;  %v925_v28 = vld [vmem:[#allocation2 + $0xb0] ss:$8 sps:$4 sm:$0xff]   ;;  %v926_v29 = vld [vmem:[#allocation2 + $0xa4] ss:$8 sps:$4 sm:$0xff]  }
  0x26   :  { %481 = vmatpush1.bf16.msra.mxu0 %v895_v8  ;;  %v928_v30 = vld [vmem:[#allocation2 + $0xa0] ss:$8 sps:$4 sm:$0xff]   ;;  %v929_v31 = vld [vmem:[#allocation2 + $0x94] ss:$8 sps:$4 sm:$0xff]   ;;  %v931_v32 = vld [vmem:[#allocation2 + $0x90] ss:$8 sps:$4 sm:$0xff]  }
  0x27   :  { %482 = vmatprep.subr.bf16.mxu0 %v896_v9  ;;  %v932_v33 = vld [vmem:[#allocation2 + $0x84] ss:$8 sps:$4 sm:$0xff]   ;;  %v934_v34 = vld [vmem:[#allocation2 + $0x80] ss:$8 sps:$4 sm:$0xff]   ;;  %v935_v35 = vld [vmem:[#allocation5 + $0x74] ss:$8 sps:$4 sm:$0xff]  }
  0x28   :  { %v937_v36 = vld [vmem:[#allocation5 + $0x70] ss:$8 sps:$4 sm:$0xff]   ;;  %v938_v37 = vld [vmem:[#allocation5 + $0x64] ss:$8 sps:$4 sm:$0xff]   ;;  %737 = vmatprep.subr.bf16.mxu1 %v935_v35  ;;  %v940_v39 = vld [vmem:[#allocation5 + $0x60] ss:$8 sps:$4 sm:$0xff]  }
  0x29   :  { %738 = vmatpush1.bf16.msra.mxu1 %v937_v36  ;;  %v941_v40 = vld [vmem:[#allocation5 + $0x54] ss:$8 sps:$4 sm:$0xff]   ;;  %v51_v41 = vand.u32 127, %v50_v38  ;;  %v943_v42 = vld [vmem:[#allocation5 + $0x50] ss:$8 sps:$4 sm:$0xff]   ;;  %s786_s8 = sshll.u32 %s1074_s7, 4  ;;  %s787_s8 = int_to_ptr.vmem [resolvable:$true] %s786_s8 }
  0x2a   :  { %483 = vmatpush1.bf16.msra.mxu0 %v898_v10  ;;  %739 = vmatprep.subr.bf16.mxu1 %v938_v37  ;;  %v944_v43 = vld [vmem:[#allocation5 + $0x44] ss:$8 sps:$4 sm:$0xff]   ;;  %v946_v45 = vld [vmem:[#allocation5 + $0x40] ss:$8 sps:$4 sm:$0xff]   ;;  %v947_v46 = vld [vmem:[#allocation5 + $0x34] ss:$8 sps:$4 sm:$0xff]   ;;  %p1042_p11 = scmp.lt.s32.totalorder %s787_s8, %s787_s8 }
  0x2b   :  { %484 = vmatprep.subr.bf16.mxu0 %v899_v11  ;;  %v52_v44 = vcvt.s32.f32 %v51_v41  ;;  %v949_v48 = vld [vmem:[#allocation5 + $0x30] ss:$8 sps:$4 sm:$0xff]   ;;  %v950_v49 = vld [vmem:[#allocation5 + $0x24] ss:$8 sps:$4 sm:$0xff]   ;;  %v952_v51 = vld [vmem:[#allocation5 + $0x20] ss:$8 sps:$4 sm:$0xff]  }
  0x2c   :  { %v1068_v2 = vmov 2102212464   ;;  %v1069_v4 = vmov 920167782   ;;  %v1070_v8 = vmov 1326507024  }
  0x2d   :  { %740 = vmatpush1.bf16.msra.mxu1 %v940_v39  ;;  %v53_v47 = vmul.f32 -0.072522365, %v52_v44  ;;  %v1071_v10 = vmov 683565275   ;;  %s1037_s9 = scalar_lea.vmem %s787_s8, 256 }
  0x2e   :  { %485 = vmatpush1.bf16.msra.mxu0 %v901_v12  ;;  %741 = vmatprep.subr.bf16.mxu1 %v941_v40  ;;  %v1072_v12 = vmov 2475754826   ;;  %p1038_p10 = scmp.ne.s32.totalorder %s787_s8, %s1037_s9  ;;  %p1043_p12 = scmp.lt.s32.totalorder %s1037_s9, %s1037_s9 }
  0x2f   :  { %486 = vmatprep.subr.bf16.mxu0 %v902_v13  ;;  %v54_v50 = vmul.f32 1.442695, %v53_v47 }
  0x30   :  { %p1044_p13 = por %p1043_p12, %p1042_p11 }
  0x31   :  { %742 = vmatpush1.bf16.msra.mxu1 %v943_v42  ;;  %983 = vpow2.f32 %v54_v50 }
  0x32   :  { %487 = vmatpush1.bf16.msra.mxu0 %v904_v14  ;;  %743 = vmatprep.subr.bf16.mxu1 %v944_v43  ;;  %p1045_p0 = pnand %p1044_p13, %p1038_p10 }
  0x33   :  { %488 = vmatprep.subr.bf16.mxu0 %v905_v15  ;;  %v1073_v15 = vmov 2131351028  }
  0x35   :  { %744 = vmatpush1.bf16.msra.mxu1 %v946_v45 }
  0x36   :  { %489 = vmatpush1.bf16.msra.mxu0 %v907_v16  ;;  %745 = vmatprep.subr.bf16.mxu1 %v947_v46 }
  0x37   :  { %490 = vmatprep.subr.bf16.mxu0 %v908_v17 }
  0x39   :  { %746 = vmatpush1.bf16.msra.mxu1 %v949_v48 }
  0x3a   :  { %491 = vmatpush1.bf16.msra.mxu0 %v910_v18  ;;  %747 = vmatprep.subr.bf16.mxu1 %v950_v49 }
  0x3b   :  { %492 = vmatprep.subr.bf16.mxu0 %v911_v19 }
  0x3d   :  { %748 = vmatpush1.bf16.msra.mxu1 %v952_v51 }
  0x3e   :  { %493 = vmatpush2.bf16.msra.mxu0 %v913_v20  ;;  %v984_v52 = vpop.eup %983 }
  0x3f   :  { %494 = vmatprep.subr.bf16.mxu0 %v914_v21 }
  0x42   :  { %495 = vmatpush2.bf16.msra.mxu0 %v916_v22 }
  0x43   :  { %496 = vmatprep.subr.bf16.mxu0 %v917_v23 }
  0x46   :  { %497 = vmatpush2.bf16.msra.mxu0 %v919_v24 }
  0x47   :  { %498 = vmatprep.subr.bf16.mxu0 %v920_v25 }
  0x4a   :  { %499 = vmatpush2.bf16.msra.mxu0 %v922_v26 }
  0x4b   :  { %500 = vmatprep.subr.bf16.mxu0 %v923_v27 }
  0x4e   :  { %501 = vmatpush2.bf16.msra.mxu0 %v925_v28 }
  0x4f   :  { %502 = vmatprep.subr.bf16.mxu0 %v926_v29 }
  0x52   :  { %503 = vmatpush2.bf16.msra.mxu0 %v928_v30 }
  0x53   :  { %504 = vmatprep.subr.bf16.mxu0 %v929_v31 }
  0x56   :  { %505 = vmatpush2.bf16.msra.mxu0 %v931_v32 }
  0x57   :  { %506 = vmatprep.subr.bf16.mxu0 %v932_v33 }
  0x5a   :  { %507 = vmatpush2.bf16.msra.mxu0 %v934_v34 }
  0x9a   :  { %v60_v53 = vpop.permute.xlu0 %59 }
  0x9b   :  { %v1115_v54 = vmul.f32 %v984_v52, %v60_v53 }
  0x9d   :  { %v66_v55 = vand.u32 2139095040, %v1115_v54  ;;  %v63_v56 = vand.u32 2147483647, %v1115_v54  ;;  %vm65_vm7 = vcmp.lt.s32.totalorder %v1115_v54, 0  ;;  %vm155_vm15 = vweird.f32 %v1115_v54 }
  0x9f   :  { %v67_v57 = vshrl.u32 %v66_v55, 23  ;;  %v70_v59 = vand.u32 8388607, %v63_v56  ;;  %vm64_vm8 = vcmp.le.f32.partialorder %v63_v56, 0.7853982 }
  0xa1   :  { %v796_v58 = vadd.s32 4294967169, %v67_v57  ;;  %v71_v62 = vor.u32 8388608, %v70_v59 }
  0xa3   :  { %v73_v60 = vadd.s32 1, %v796_v58  ;;  %v111_v6 = vshll.u32 %v71_v62, 8 }
  0xa5   :  { %vm74_vm0 = vcmp.gt.s32.totalorder %v73_v60, 0 }
  0xa6   :  { %v75_v61 = vsel %vm74_vm0, %v73_v60, 0 }
  0xa7   :  { %v77_v63 = vand.u32 31, %v75_v61  ;;  %v76_v0 = vshrl.u32 %v75_v61, 5 }
  0xa9   :  { %v78_v1 = vsub.s32 32, %v77_v63  ;;  %v89_v3 = vshll.u32 %v1068_v2, %v77_v63  ;;  %v92_v5 = vshll.u32 %v1069_v4, %v77_v63  ;;  %v80_v11 = vshll.u32 %v1071_v10, %v77_v63 }
  0xaa   :  { %v83_v14 = vshll.u32 %v1072_v12, %v77_v63  ;;  %v86_v17 = vshll.u32 %v1073_v15, %v77_v63  ;;  %vm98_vm1 = vcmp.lt.s32.totalorder %v76_v0, 4  ;;  %vm95_vm2 = vcmp.lt.s32.totalorder %v76_v0, 1 }
  0xab   :  { %v90_v7 = vshrl.u32 %v1069_v4, %v78_v1  ;;  %v93_v9 = vshrl.u32 %v1070_v8, %v78_v1  ;;  %v81_v13 = vshrl.u32 %v1072_v12, %v78_v1  ;;  %v84_v16 = vshrl.u32 %v1073_v15, %v78_v1 }
  0xac   :  { %v87_v18 = vshrl.u32 %v1068_v2, %v78_v1  ;;  %v79_v22 = vshrl.u32 %v1071_v10, %v78_v1  ;;  %vm96_vm3 = vcmp.lt.s32.totalorder %v76_v0, 2  ;;  %vm97_vm4 = vcmp.lt.s32.totalorder %v76_v0, 3 }
  0xad   :  { %v91_v19 = vor.u32 %v90_v7, %v89_v3  ;;  %v94_v20 = vor.u32 %v93_v9, %v92_v5  ;;  %v82_v21 = vor.u32 %v81_v13, %v80_v11  ;;  %v85_v23 = vor.u32 %v84_v16, %v83_v14 }
  0xae   :  { %v88_v24 = vor.u32 %v87_v18, %v86_v17 }
  0xaf   :  { %v104_v25 = vsel %vm98_vm1, %v91_v19, 920167782  ;;  %v108_v26 = vsel %vm98_vm1, %v94_v20, 1326507024  ;;  %v103_v28 = vsel %vm95_vm2, %v82_v21, %v85_v23  ;;  %v99_v31 = vsel %vm95_vm2, %v79_v22, %v82_v21 }
  0xb0   :  { %v100_v27 = vsel %vm98_vm1, %v88_v24, 2102212464  ;;  %v105_v29 = vsel %vm97_vm4, %v88_v24, %v104_v25  ;;  %v107_v30 = vsel %vm95_vm2, %v85_v23, %v88_v24  ;;  %v109_v34 = vsel %vm97_vm4, %v91_v19, %v108_v26 }
  0xb1   :  { %v101_v32 = vsel %vm97_vm4, %v85_v23, %v100_v27  ;;  %v106_v33 = vsel %vm96_vm3, %v103_v28, %v105_v29  ;;  %v110_v35 = vsel %vm96_vm3, %v107_v30, %v109_v34  ;;  %v953_v27 = vld [vmem:[#allocation5 + $0x14] ss:$8 sps:$4 sm:$0xff]   ;;  %v955_v28 = vld [vmem:[#allocation5 + $0x10] ss:$8 sps:$4 sm:$0xff]   ;;  %v956_v29 = vld [vmem:[#allocation5 + $0x4] ss:$8 sps:$4 sm:$0xff]  }
  0xb2   :  { %v1121_v36 = vmul.u32.u64.low %v111_v6, %v106_v33  ;;  %v1122_v37 = vmul.u32.u64.high %v111_v6, %v106_v33, %v1121_v36  ;;  %v1124_v39 = vmul.u32.u64.low %v111_v6, %v110_v35  ;;  %v1125_v40 = vmul.u32.u64.high %v111_v6, %v110_v35, %v1124_v39  ;;  %749 = vmatprep.subr.bf16.mxu1 %v953_v27  ;;  %v958_v30 = vld [vmem:[#allocation5] ss:$8 sps:$4 sm:$0xff]   ;;  %v965_v34 = vld [vmem:[#allocation5 + $0xd4] ss:$8 sps:$4 sm:$0xff]   ;;  %v967_v35 = vld [vmem:[#allocation5 + $0xd0] ss:$8 sps:$4 sm:$0xff]  }
  0xb3   :  { %v102_v41 = vsel %vm96_vm3, %v99_v31, %v101_v32  ;;  %750 = vmatpush1.bf16.msra.mxu1 %v955_v28  ;;  %v959_v31 = vld [vmem:[#allocation5 + $0xf4] ss:$8 sps:$4 sm:$0xff]   ;;  %v961_v32 = vld [vmem:[#allocation5 + $0xf0] ss:$8 sps:$4 sm:$0xff]   ;;  %v964_v33 = vld [vmem:[#allocation5 + $0xe0] ss:$8 sps:$4 sm:$0xff]  }
  0xb4   :  { %v121_v42 = vadd.s32 1, %v1122_v37  ;;  %v118_v43 = vmul.u32 %v111_v6, %v102_v41  ;;  %vm120_vm5 = vc.u32 %v1125_v40, %v1121_v36  ;;  %v119_v57 = vadd.s32 %v1121_v36, %v1125_v40  ;;  %751 = vmatprep.subr.bf16.mxu1 %v956_v29  ;;  %v968_v36 = vld [vmem:[#allocation5 + $0xc4] ss:$8 sps:$4 sm:$0xff]   ;;  %v971_v39 = vld [vmem:[#allocation5 + $0xb4] ss:$8 sps:$4 sm:$0xff]  }
  0xb5   :  { %v973_v40 = vld [vmem:[#allocation5 + $0xb0] ss:$8 sps:$4 sm:$0xff]   ;;  %v974_v41 = vld [vmem:[#allocation5 + $0xa4] ss:$8 sps:$4 sm:$0xff]  }
  0xb6   :  { %v122_v44 = vsel %vm120_vm5, %v121_v42, %v1122_v37  ;;  %v970_v37 = vld [vmem:[#allocation5 + $0xc0] ss:$8 sps:$4 sm:$0xff]  }
  0xb7   :  { %v123_v45 = vadd.s32 %v122_v44, %v118_v43  ;;  %752 = vmatpush1.bf16.msra.mxu1 %v958_v30  ;;  %v976_v42 = vld [vmem:[#allocation5 + $0xa0] ss:$8 sps:$4 sm:$0xff]   ;;  %v977_v43 = vld [vmem:[#allocation5 + $0x94] ss:$8 sps:$4 sm:$0xff]   ;;  %v979_v44 = vld [vmem:[#allocation5 + $0x90] ss:$8 sps:$4 sm:$0xff]  }
  0xb8   :  { %753 = vmatprep.subr.bf16.mxu1 %v959_v31 }
  0xb9   :  { %v124_v46 = vadd.s32 536870912, %v123_v45 }
  0xbb   :  { %v125_v47 = vshrl.u32 %v124_v46, 30  ;;  %754 = vmatpush2.bf16.msra.mxu1 %v961_v32  ;;  %v982_v46 = vld [vmem:[#allocation5 + $0x80] ss:$8 sps:$4 sm:$0xff]  }
  0xbd   :  { %v126_v48 = vshll.u32 %v125_v47, 30  ;;  %v149_v6 = vsub.s32 4, %v125_v47 }
  0xbf   :  { %v127_v49 = vsub.s32 %v123_v45, %v126_v48  ;;  %v150_v9 = vsel %vm65_vm7, %v149_v6, %v125_v47  ;;  %v980_v45 = vld [vmem:[#allocation5 + $0x84] ss:$8 sps:$4 sm:$0xff]   ;;  %v307_v47 = vshrl.u32 %v50_v38, 7 }
  0xc0   :  { %v152_v10 = vsel %vm64_vm8, 0, %v150_v9 }
  0xc1   :  { %v129_v50 = vsub.s32 0, %v127_v49  ;;  %v156_v11 = vadd.s32 3, %v152_v10  ;;  %v261_v13 = vand.u32 3, %v152_v10  ;;  %v308_v48 = vsub.s32 0, %v307_v47 }
  0xc3   :  { %v797_v51 = vmin.u32 %v129_v50, %v127_v49  ;;  %v157_v12 = vand.u32 3, %v156_v11  ;;  %vm266_vm10 = vcmp.eq.s32.totalorder %v261_v13, 2  ;;  %vm263_vm12 = vcmp.eq.s32.totalorder %v261_v13, 0 }
  0xc4   :  { %vm262_vm14 = vcmp.lt.s32.totalorder %v261_v13, 2  ;;  %v312_v50 = vsub.s32 1, %v307_v47 }
  0xc5   :  { %v131_v52 = vclz %v797_v51  ;;  %vm162_vm9 = vcmp.eq.s32.totalorder %v157_v12, 2  ;;  %vm159_vm11 = vcmp.eq.s32.totalorder %v157_v12, 0  ;;  %vm158_vm13 = vcmp.lt.s32.totalorder %v157_v12, 2 }
  0xc7   :  { %v798_v53 = vadd.s32 4294967294, %v131_v52 }
  0xc9   :  { %vm799_vm6 = vcmp.lt.s32.totalorder %v798_v53, 0 }
  0xca   :  { %v134_v55 = vsel %vm799_vm6, 0, %v798_v53 }
  0xcb   :  { %v135_v58 = vsub.s32 32, %v134_v55  ;;  %v139_v59 = vsub.s32 4294967266, %v134_v55  ;;  %v136_v60 = vshll.u32 %v127_v49, %v134_v55  ;;  %v304_v49 = vld [vmem:[%s1148_s2] sm:$0x3] }
  0xcc   :  { %v309_v51 = vrot.slane %v304_v49, %v308_v48  ;;  %v313_v52 = vrot.slane %v304_v49, %v312_v50 }
  0xcd   :  { %v137_v61 = vshrl.u32 %v119_v57, %v135_v58  ;;  %v140_v62 = vadd.s32 127, %v139_v59 }
  0xcf   :  { %v138_v63 = vor.u32 %v137_v61, %v136_v60  ;;  %v141_v0 = vshll.u32 %v140_v62, 23 }
  0xd1   :  { %v142_v1 = vor.u32 4788187, %v141_v0  ;;  %v145_v3 = vcvt.s32.f32 %v138_v63 }
  0xd3   :  { %v143_v2 = vand.u32 2147483647, %v142_v1 }
  0xd5   :  { %v146_v4 = vmul.f32 %v145_v3, %v143_v2 }
  0xd7   :  { %v147_v5 = vxor.u32 2147483648, %v146_v4 }
  0xd9   :  { %v148_v7 = vsel %vm65_vm7, %v147_v5, %v146_v4 }
  0xda   :  { %v151_v8 = vsel %vm64_vm8, %v1115_v54, %v148_v7  ;;  %v962_v54 = vld [vmem:[#allocation5 + $0xe4] ss:$8 sps:$4 sm:$0xff]  }
  0xdb   :  { %985 = vcosq.f32 %v151_v8  ;;  %755 = vmatprep.subr.bf16.mxu1 %v962_v54 }
  0xdc   :  { %987 = vsinq.f32 %v151_v8  ;;  %756 = vmatpush2.bf16.msra.mxu1 %v964_v33  ;;  %v565_v8 = vld [vmem:[%s1150_s4] sm:$0x3] }
  0xdd   :  { %757 = vmatprep.subr.bf16.mxu1 %v965_v34  ;;  %v570_v9 = vrot.slane %v565_v8, %v308_v48  ;;  %v574_v10 = vrot.slane %v565_v8, %v312_v50 }
  0xe0   :  { %758 = vmatpush2.bf16.msra.mxu1 %v967_v35 }
  0xe1   :  { %759 = vmatprep.subr.bf16.mxu1 %v968_v36 }
  0xe4   :  { %760 = vmatpush2.bf16.msra.mxu1 %v970_v37 }
  0xe5   :  { %761 = vmatprep.subr.bf16.mxu1 %v971_v39 }
  0xe8   :  { %v986_v14 = vpop.eup %985  ;;  %762 = vmatpush2.bf16.msra.mxu1 %v973_v40 }
  0xe9   :  { %v988_v15 = vpop.eup %987  ;;  %v163_v16 = vxor.u32 2147483648, %v986_v14  ;;  %763 = vmatprep.subr.bf16.mxu1 %v974_v41 }
  0xea   :  { %v160_v17 = vxor.u32 2147483648, %v988_v15 }
  0xeb   :  { %v164_v18 = vsel %vm162_vm9, %v163_v16, %v988_v15  ;;  %v268_v56 = vsel %vm266_vm10, %v163_v16, %v988_v15 }
  0xec   :  { %v161_v19 = vsel %vm159_vm11, %v986_v14, %v160_v17  ;;  %v265_v20 = vsel %vm263_vm12, %v986_v14, %v160_v17  ;;  %764 = vmatpush2.bf16.msra.mxu1 %v976_v42 }
  0xed   :  { %v165_v21 = vsel %vm158_vm13, %v161_v19, %v164_v18  ;;  %v269_v22 = vsel %vm262_vm14, %v265_v20, %v268_v56  ;;  %765 = vmatprep.subr.bf16.mxu1 %v977_v43 }
  0xee   :  { %v166_v23 = vsel %vm155_vm15, nan, %v165_v21  ;;  %v270_v24 = vsel %vm155_vm15, nan, %v269_v22 }
  0xef   :  { %v167_v25 = vpack.c.bf16 %v166_v23, %v166_v23  ;;  %v271_v26 = vpack.c.bf16 %v270_v24, %v270_v24 }
  0xf0   :  { %766 = vmatpush2.bf16.msra.mxu1 %v979_v44 }
  0xf1   :  { %508 = vmatprep.mubr.bf16.mxu0 %v271_v26  ;;  %767 = vmatprep.subr.bf16.mxu1 %v980_v45 }
  0xf2   :  { %509 = vmatmul.mubr.bf16.vlgmr.msra.gmra.mxu0 %v167_v25 }
  0xf4   :  { %768 = vmatpush2.bf16.msra.mxu1 %v982_v46 }
 0x1b2   :  { %v510_v53 = vpop.f32.mrf.mxu0 }
 0x1b3   :  { %v511_v55 = vadd.f32 %v510_v53, %v309_v51 }
 0x1b4   :  { %v512_v57 = vpop.f32.mrf.mxu0 }
 0x1b5   :  { %v836_v58 = vmul.f32 -1.442695, %v511_v55  ;;  %v513_v59 = vadd.f32 %v512_v57, %v313_v52 }
 0x1b6   :  { %v514_v60 = vpop.f32.mrf.mxu0 }
 0x1b7   :  { %989 = vpow2.f32 %v836_v58  ;;  %v837_v61 = vmul.f32 -1.442695, %v513_v59 }
 0x1b8   :  { %v515_v62 = vpop.f32.mrf.mxu0 }
 0x1b9   :  { %991 = vpow2.f32 %v837_v61 }
 0x1c4   :  { %v990_v63 = vpop.eup %989 }
 0x1c5   :  { %v523_v38 = vadd.f32 1.0, %v990_v63 }
 0x1c6   :  { %v992_v0 = vpop.eup %991 }
 0x1c7   :  { %993 = vrcp.f32 %v523_v38  ;;  %v524_v1 = vadd.f32 1.0, %v992_v0 }
 0x1c9   :  { %995 = vrcp.f32 %v524_v1 }
 0x1d4   :  { %v994_v2 = vpop.eup %993 }
 0x1d5   :  { %v529_v4 = vmul.f32 %v994_v2, %v511_v55 }
 0x1d6   :  { %v996_v3 = vpop.eup %995 }
 0x1d7   :  { %v530_v5 = vmul.f32 %v996_v3, %v513_v59  ;;  %v531_v7 = vpack.c.bf16 %v529_v4, %v529_v4 }
 0x1d9   :  { %v532_v6 = vpack.c.bf16 %v530_v5, %v530_v5 }
 0x1db   :  { %769 = vmatprep.mubr.bf16.mxu1 %v532_v6 }
 0x1dc   :  { %770 = vmatmul.mubr.bf16.vlgmr.msra.gmra.mxu1 %v531_v7 }
 0x29c   :  { %v771_v11 = vpop.f32.mrf.mxu1 }
 0x29d   :  { %v772_v12 = vadd.f32 %v771_v11, %v570_v9 }
 0x29e   :  { %v773_v13 = vpop.f32.mrf.mxu1 }
 0x29f   :  { %778 = vst [vmem:[#allocation7] sm:$0xff] %v772_v12  ;;  %v774_v14 = vadd.f32 %v773_v13, %v574_v10 }
 0x2a0   :  { %v775_v15 = vpop.f32.mrf.mxu1 }
 0x2a1   :  { %779 = vst [vmem:[#allocation7 + $0x8] sm:$0xff] %v774_v14 }
 0x2a2   :  { %v776_v16 = vpop.f32.mrf.mxu1 }
 0x2a3   :  { %1048 = shalt.err (!%p1045_p0)
}
 0x2a4   :  { %789 = dma.vmem_to_hbm [thread:$0]  %s787_s8, 256, %s1151_s5, [#allocation4]  }
 0x2a5   :  { %1061 = dma.done.wait [#allocation4], 256  }
 0x2a6   :  { %1062 = vsyncadd [#allocation4], 4294967040 }
 0x2a7   :  { %793 = vsyncpa [#allocation3], 1 }
 0x2a8   :  { %794 = vsyncpa [#allocation6], 1 }
 0x2a9   :  { %795 = vsyncpa [#allocation4], 1 }

</bundles_post_ra>
